<compile_context>
chip_gen: v5e
topology: v5e:2x2
jax: 0.10.0
libtpu: 0.0.40
codegen_flags: <defaults>
</compile_context>

<pallas_src>
import jax
import jax.numpy as jnp
from jax.experimental import pallas as pl
from jax.experimental.pallas import tpu as pltpu


_TM_CAP = 256                      # max batch (token) tile: MXU M dim / VMEM cap
_VMEM_DATA_BUDGET = 30 * 1024**2   # target for double-buffered data blocks
_VMEM_LIMIT_BYTES = 48 * 1024**2   # scoped VMEM limit, safe on v5e/v6e/v7x


def _round_up(x, m):
    return (x + m - 1) // m * m


def _largest_divisor_tile(padded_dim, candidates):
    for c in candidates:
        if padded_dim % c == 0:
            return c
    return 128


# --------------------------------------------------------------------------
# Kernels
# --------------------------------------------------------------------------
def _head_fullk_kernel(x_ref, w_ref, b_ref, o_ref):
    """Grid (i, j): o[tm, tn] = x[tm, D] @ w[D, tn] + b[1, tn]."""
    acc = jnp.dot(x_ref[...], w_ref[...], preferred_element_type=jnp.float32)
    o_ref[...] = (acc + b_ref[...]).astype(o_ref.dtype)


def _head_ktiled_kernel(x_ref, w_ref, b_ref, o_ref, acc_ref):
    """Grid (i, j, k): acc[tm, tn] += x[tm, tk] @ w[tk, tn]; bias at last k."""
    k = pl.program_id(2)

    @pl.when(k == 0)
    def _():
        acc_ref[...] = jnp.zeros_like(acc_ref)

    acc_ref[...] += jnp.dot(x_ref[...], w_ref[...],
                            preferred_element_type=jnp.float32)

    @pl.when(k == pl.num_programs(2) - 1)
    def _():
        o_ref[...] = (acc_ref[...] + b_ref[...]).astype(o_ref.dtype)


# --------------------------------------------------------------------------
# One-time (init) weight preparation -- NOT in the per-call hot path.
# --------------------------------------------------------------------------
def prepare_head_params(weight, bias, *, stream_dtype=None):
    """Pad + transpose (+ optionally cast) the static nn.Linear parameters once.

    weight: (C, D)  PyTorch layout (out_features, in_features)
    bias:   (C,)
    stream_dtype: e.g. jnp.bfloat16 to halve HBM traffic (f32 accumulation);
                  None keeps the original dtype (exact nn.Linear numerics).
    """
    C, D = weight.shape
    w_dtype = jnp.dtype(stream_dtype) if stream_dtype is not None else jnp.dtype(weight.dtype)

    C_p = _round_up(C, 128)
    D_p = _round_up(D, 128)
    tn = _largest_divisor_tile(C_p, (512, 256, 128))

    # Pad + transpose once: (C, D) -> (D_p, C_p).  Zero-padded D rows of the
    # transposed weight make padded x columns contribute nothing.
    w_t = jnp.zeros((D_p, C_p), w_dtype).at[:D, :C].set(weight.T.astype(w_dtype))
    # Bias kept in f32: it is added to the f32 accumulator exactly once.
    b_p = jnp.zeros((1, C_p), jnp.float32).at[0, :C].set(bias.astype(jnp.float32))

    return {
        "w_t": w_t, "b_p": b_p,
        "C": C, "D": D, "C_p": C_p, "D_p": D_p, "tn": tn,
        "stream_dtype": w_dtype,
    }


# --------------------------------------------------------------------------
# Hot path
# --------------------------------------------------------------------------
def apply_head(params, x):
    """Computes x @ weight.T + bias (PyTorch nn.Linear semantics)."""
    C, D = params["C"], params["D"]
    C_p, D_p, tn = params["C_p"], params["D_p"], params["tn"]
    w_t, b_p = params["w_t"], params["b_p"]
    cdt = params["stream_dtype"]

    orig_shape = x.shape
    assert orig_shape[-1] == D, f"expected last dim {D}, got {orig_shape[-1]}"
    out_dtype = x.dtype
    x2 = x.reshape(-1, D)
    B = x2.shape[0]

    # M (token) tiling: cap the per-block batch, keep sublane alignment.
    sub = 8 if cdt.itemsize >= 4 else (16 if cdt.itemsize == 2 else 32)
    if B > _TM_CAP:
        tm = _TM_CAP
        B_p = _round_up(B, tm)
    else:
        tm = _round_up(max(B, 1), sub)
        B_p = tm

    # Pad/cast only the (small) activation in the hot path; skip when aligned.
    if (B_p, D_p) == x2.shape and x2.dtype == cdt:
        x_p = x2
    else:
        x_p = jnp.zeros((B_p, D_p), cdt).at[:B, :D].set(x2.astype(cdt))

    w_bytes = cdt.itemsize
    out_bytes = jnp.dtype(out_dtype).itemsize

    # Can a full-D weight slab (double-buffered), the resident x row-block and
    # the output block all fit in the VMEM budget?
    est_fullk = 2 * (tn * D_p * w_bytes + tm * D_p * w_bytes + tm * tn * out_bytes)
    use_fullk = est_fullk <= _VMEM_DATA_BUDGET

    if use_fullk:
        grid = (B_p // tm, C_p // tn)  # (M parallel, N parallel)
        grid_spec = pltpu.PrefetchScalarGridSpec(
            num_scalar_prefetch=0,
            grid=grid,
            in_specs=[
                # x row-block stays VMEM-resident across the weight stream.
                pl.BlockSpec((tm, D_p), lambda i, j: (i, 0)),
                # full-D weight slab, streamed over N.
                pl.BlockSpec((D_p, tn), lambda i, j: (0, j)),
                pl.BlockSpec((1, tn), lambda i, j: (0, j)),
            ],
            out_specs=pl.BlockSpec((tm, tn), lambda i, j: (i, j)),
        )
        kernel = _head_fullk_kernel
        dim_sem = ("parallel", "parallel")
    else:
        # Very large D: tile the reduction; pick the biggest tk that divides
        # D_p and keeps the weight tile <= ~4 MiB.
        tk_cands = [c for c in (2048, 1024, 512, 256, 128)
                    if tn * c * w_bytes <= 4 * 1024**2]
        tk = _largest_divisor_tile(D_p, tuple(tk_cands) or (128,))
        grid = (B_p // tm, C_p // tn, D_p // tk)  # K last (reduction)
        grid_spec = pltpu.PrefetchScalarGridSpec(
            num_scalar_prefetch=0,
            grid=grid,
            in_specs=[
                pl.BlockSpec((tm, tk), lambda i, j, k: (i, k)),
                pl.BlockSpec((tk, tn), lambda i, j, k: (k, j)),
                pl.BlockSpec((1, tn), lambda i, j, k: (0, j)),
            ],
            out_specs=pl.BlockSpec((tm, tn), lambda i, j, k: (i, j)),
            scratch_shapes=[pltpu.VMEM((tm, tn), jnp.float32)],
        )
        kernel = _head_ktiled_kernel
        dim_sem = ("parallel", "parallel", "arbitrary")

    out_p = pl.pallas_call(
        kernel,
        out_shape=jax.ShapeDtypeStruct((B_p, C_p), out_dtype),
        grid_spec=grid_spec,
        compiler_params=pltpu.CompilerParams(
            dimension_semantics=dim_sem,
            vmem_limit_bytes=_VMEM_LIMIT_BYTES,
        ),
    )(x_p, w_t, b_p)

    out = out_p[:B, :C]
    return out.reshape(orig_shape[:-1] + (C,))


def classification_head(x, weight, bias, *, stream_dtype=None):
    """One-shot convenience wrapper.  For hot loops, call prepare_head_params
    once and reuse the params with apply_head (avoids re-padding the weight)."""
    return apply_head(prepare_head_params(weight, bias, stream_dtype=stream_dtype), x)


if __name__ == "__main__":
    # Small shapes consistent with the module: batch=2, input_dim=32, num_classes=8.
    B, input_dim, num_classes = 2, 32, 8

    key = jax.random.PRNGKey(0)
    kx, kw, kb = jax.random.split(key, 3)

    # Deterministic init mimicking nn.Linear (uniform +/- 1/sqrt(in_features)).
    bound = 1.0 / (input_dim ** 0.5)
    weight = jax.random.uniform(kw, (num_classes, input_dim),
                                minval=-bound, maxval=bound, dtype=jnp.float32)
    bias = jax.random.uniform(kb, (num_classes,),
                              minval=-bound, maxval=bound, dtype=jnp.float32)
    x = jax.random.normal(kx, (B, input_dim), dtype=jnp.float32)

    ref = x @ weight.T + bias

    # Exact f32 path (weights prepped once, outside the hot path).
    params = prepare_head_params(weight, bias)
    out = apply_head(params, x)
    jax.block_until_ready(out)
    assert out.shape == (B, num_classes)
    assert jnp.allclose(out, ref, atol=1e-5, rtol=1e-5)

    # bf16 weight-streaming path (recommended for inference: halves HBM
    # traffic, f32 accumulation); looser tolerance by construction.
    params_bf16 = prepare_head_params(weight, bias, stream_dtype=jnp.bfloat16)
    out_bf16 = apply_head(params_bf16, x)
    jax.block_until_ready(out_bf16)
    assert out_bf16.shape == (B, num_classes)
    assert jnp.allclose(out_bf16, ref, atol=3e-2, rtol=3e-2)

    print("KERNEL_OK")
</pallas_src>

<mosaic_0001>
module attributes {stable_mosaic.version = 11 : i64} {
  func.func @_head_fullk_kernel(%arg0: i32, %arg1: i32, %arg2: memref<8x128xf32, #tpu.memory_space<vmem>>, %arg3: memref<128x128xf32, #tpu.memory_space<vmem>>, %arg4: memref<1x128xf32, #tpu.memory_space<vmem>>, %arg5: memref<8x128xf32, #tpu.memory_space<vmem>>) attributes {dimension_semantics = [#tpu.dimension_semantics<parallel>, #tpu.dimension_semantics<parallel>], iteration_bounds = array<i64: 1, 1>, scalar_prefetch = 0 : i64, scratch_operands = 0 : i64, tpu.core_type = #tpu.core_type<tc>, window_params = [{transform_indices = @transform_0, window_bounds = array<i64: 8, 128>}, {transform_indices = @transform_1, window_bounds = array<i64: 128, 128>}, {transform_indices = @transform_2, window_bounds = array<i64: 1, 128>}, {transform_indices = @transform_3, window_bounds = array<i64: 8, 128>}]} {
    %c0 = arith.constant 0 : index
    %c0_0 = arith.constant 0 : index
    %0 = vector.load %arg2[%c0, %c0_0] : memref<8x128xf32, #tpu.memory_space<vmem>>, vector<8x128xf32>
    %c0_1 = arith.constant 0 : index
    %c0_2 = arith.constant 0 : index
    %1 = vector.load %arg3[%c0_1, %c0_2] : memref<128x128xf32, #tpu.memory_space<vmem>>, vector<128x128xf32>
    %cst = arith.constant dense<0.000000e+00> : vector<8x128xf32>
    %2 = tpu.matmul %0, %1, %cst {dimension_numbers = #tpu.dot_dimension_numbers<[1], [0], [0], [1], [0, 0, 1, 1], [], []>} : vector<8x128xf32>, vector<128x128xf32>, vector<8x128xf32> -> vector<8x128xf32>
    %c0_3 = arith.constant 0 : index
    %c0_4 = arith.constant 0 : index
    %3 = vector.load %arg4[%c0_3, %c0_4] : memref<1x128xf32, #tpu.memory_space<vmem>>, vector<1x128xf32>
    %4 = vector.broadcast %3 : vector<1x128xf32> to vector<8x128xf32>
    %5 = arith.addf %2, %4 : vector<8x128xf32>
    %c0_5 = arith.constant 0 : index
    %c0_6 = arith.constant 0 : index
    %6 = vector.load %arg5[%c0_5, %c0_6] : memref<8x128xf32, #tpu.memory_space<vmem>>, vector<8x128xf32>
    tpu.vector_store %arg5[%c0_5, %c0_6], %5 {strides = array<i32>} : memref<8x128xf32, #tpu.memory_space<vmem>>, vector<8x128xf32>,
    return
  }
  func.func @transform_0(%arg0: i32, %arg1: i32) -> (i32, i32) {
    %c0_i32 = arith.constant 0 : i32
    %c0_i32_0 = arith.constant 0 : i32
    return %arg0, %c0_i32 : i32, i32
  }
  func.func @transform_1(%arg0: i32, %arg1: i32) -> (i32, i32) {
    %c0_i32 = arith.constant 0 : i32
    %c0_i32_0 = arith.constant 0 : i32
    return %c0_i32, %arg1 : i32, i32
  }
  func.func @transform_2(%arg0: i32, %arg1: i32) -> (i32, i32) {
    %c0_i32 = arith.constant 0 : i32
    %c0_i32_0 = arith.constant 0 : i32
    return %c0_i32, %arg1 : i32, i32
  }
  func.func @transform_3(%arg0: i32, %arg1: i32) -> (i32, i32) {
    %c0_i32 = arith.constant 0 : i32
    return %arg0, %arg1 : i32, i32
  }
}

</mosaic_0001>

<bundles_post_ra>
// kernel: tpu_custom_call.1
= control target key start
LH: loop header
LB: loop body
LE: loop exit
PB: predicated region body
PF: predicated region fallthrough
CT: control target
= control target key end

     0   :  { %8 = vsyncpa [#allocation3], 0  ;;  %s226_s0 = inlined_call_operand.hbm [shape: f32[8,128], index: 0, kind: input, shape index: {}]   ;;  %s227_s1 = inlined_call_operand.hbm [shape: f32[128,128], index: 1, kind: input, shape index: {}]   ;;  %s228_s2 = inlined_call_operand.vmem [shape: f32[1,128], index: 2, kind: input, shape index: {}]   ;;  %s229_s3 = inlined_call_operand.hbm [shape: f32[8,128], index: 3, kind: output, shape index: {}]  }
   0x1   :  { %9 = vsyncpa [#allocation6], 0 }
   0x2   :  { %10 = vsyncpa [#allocation4], 0  ;;  %s16_s14 = sshll.u32 %s226_s0, 4  ;;  %s189_s15 = smov [#allocation2]   ;;  %s17_s14 = int_to_ptr.hbm [resolvable:$true] %s16_s14 }
   0x3   :  { %s18_s16 = sshll.u32 %s189_s15, 4  ;;  %s26_s19 = sshll.u32 %s227_s1, 4  ;;  %s19_s16 = int_to_ptr.vmem [resolvable:$true] %s18_s16  ;;  %s27_s19 = int_to_ptr.hbm [resolvable:$true] %s26_s19 }
   0x4   :  { %21 = dma.hbm_to_vmem [thread:$0]  %s17_s14, 128, %s19_s16, [#allocation3]  }
   0x5   :  { %s190_s20 = smov [#allocation5]   ;;  %s191_s22 = smov 128  }
   0x6   :  { %s28_s21 = sshll.u32 %s190_s20, 4  ;;  %s192_s23 = smov 8   ;;  %s29_s21 = int_to_ptr.vmem [resolvable:$true] %s28_s21 }
   0x7   :  { %34 = dma.hbm_to_vmem [thread:$0]  %s27_s19, 2048, %s29_s21, [#allocation6], %s191_s22, %s191_s22, %s192_s23  }
   0x8   :  { %183 = dma.done.wait [#allocation3], 128  }
   0x9   :  { %184 = vsyncadd [#allocation3], 4294967168 }
   0xa   :  { %185 = dma.done.wait [#allocation6], 2048  }
   0xb   :  { %186 = vsyncadd [#allocation6], 4294965248  ;;  %v61_v0 = vld [vmem:[#allocation5 + $0x78] sm:$0xff]  ;;  %v60_v1 = vld [vmem:[#allocation5 + $0x70] sm:$0xff]  ;;  %s193_s24 = smov [#allocation7]   ;;  %s94_s28 = sshll.u32 %s229_s3, 4  ;;  %s95_s28 = int_to_ptr.hbm [resolvable:$true] %s94_s28 }
   0xc   :  { %66 = vmatpush.msra.mxu0 %v61_v0  ;;  %v59_v2 = vld [vmem:[#allocation5 + $0x68] sm:$0xff]  ;;  %v58_v3 = vld [vmem:[#allocation5 + $0x60] sm:$0xff]  ;;  %v57_v4 = vld [vmem:[#allocation5 + $0x58] sm:$0xff]  ;;  %s92_s25 = sshll.u32 %s193_s24, 4  ;;  %s93_s25 = int_to_ptr.vmem [resolvable:$true] %s92_s25 }
   0xd   :  { %v56_v5 = vld [vmem:[#allocation5 + $0x50] sm:$0xff]  ;;  %v55_v6 = vld [vmem:[#allocation5 + $0x48] sm:$0xff]  ;;  %v54_v7 = vld [vmem:[#allocation5 + $0x40] sm:$0xff] }
   0xe   :  { %67 = vmatpush.msra.mxu0 %v60_v1  ;;  %v53_v8 = vld [vmem:[#allocation5 + $0x38] sm:$0xff]  ;;  %v52_v9 = vld [vmem:[#allocation5 + $0x30] sm:$0xff]  ;;  %v51_v10 = vld [vmem:[#allocation5 + $0x28] sm:$0xff] }
   0xf   :  { %v50_v11 = vld [vmem:[#allocation5 + $0x20] sm:$0xff]  ;;  %v49_v12 = vld [vmem:[#allocation5 + $0x18] sm:$0xff]  ;;  %v48_v13 = vld [vmem:[#allocation5 + $0x10] sm:$0xff] }
  0x10   :  { %68 = vmatpush.msra.mxu0 %v59_v2  ;;  %v47_v14 = vld [vmem:[#allocation5 + $0x8] sm:$0xff]  ;;  %v46_v15 = vld [vmem:[#allocation5] sm:$0xff]  ;;  %v45_v16 = vld [vmem:[#allocation2] sm:$0xff] }
  0x11   :  { %v110_v17 = vld [vmem:[%s228_s2] ss:$0 sm:$0xff] }
  0x12   :  { %69 = vmatpush.msra.mxu0 %v58_v3 }
  0x14   :  { %70 = vmatpush.msra.mxu0 %v57_v4 }
  0x16   :  { %71 = vmatpush.msra.mxu0 %v56_v5 }
  0x18   :  { %72 = vmatpush.msra.mxu0 %v55_v6 }
  0x1a   :  { %73 = vmatpush.msra.mxu0 %v54_v7 }
  0x1c   :  { %74 = vmatpush.msra.mxu0 %v53_v8 }
  0x1e   :  { %75 = vmatpush.msra.mxu0 %v52_v9 }
  0x20   :  { %76 = vmatpush.msra.mxu0 %v51_v10 }
  0x22   :  { %77 = vmatpush.msra.mxu0 %v50_v11 }
  0x24   :  { %78 = vmatpush.msra.mxu0 %v49_v12 }
  0x26   :  { %79 = vmatpush.msra.mxu0 %v48_v13 }
  0x28   :  { %80 = vmatpush.msra.mxu0 %v47_v14 }
  0x2a   :  { %81 = vmatpush.msra.mxu0 %v46_v15 }
  0x2b   :  { %82 = vmatmul.f32.vlgmr.msra.gmra.mxu0 %v45_v16 }
  0xa8   :  { %v83_v18 = vpop.f32.mrf.mxu0 }
  0xa9   :  { %v84_v19 = vadd.f32 %v110_v17, %v83_v18 }
  0xab   :  { %86 = vst [vmem:[#allocation7] sm:$0xff] %v84_v19 }
  0xac   :  { %97 = dma.vmem_to_hbm [thread:$0]  %s93_s25, 128, %s95_s28, [#allocation4]  }
  0xad   :  { %187 = dma.done.wait [#allocation4], 128  }
  0xae   :  { %188 = vsyncadd [#allocation4], 4294967168 }
  0xaf   :  { %102 = vsyncpa [#allocation3], 1 }
  0xb0   :  { %103 = vsyncpa [#allocation6], 1 }
  0xb1   :  { %104 = vsyncpa [#allocation4], 1 }

</bundles_post_ra>
